<compile_context>
chip_gen: v7x
topology: tpu7x:2x2x1
jax: 0.10.0
libtpu: 0.0.40
codegen_flags: <defaults>
</compile_context>

<pallas_src>
import jax
import jax.numpy as jnp
from jax.experimental import pallas as pl
from jax.experimental.pallas import tpu as pltpu

IN_FEATURES = 28 * 28        # 784 (full K, no padding)
H1 = 128
N_CLASSES = 10
C_PAD = 128                  # padded class dim (lane-dense output)
BATCH_TILE_MAX = 2048        # max rows of the batch per grid step
MIN_ROWS_PER_STEP = 256      # only split into >=2 steps if each step has this much
NEG_BIG = -1e30              # bias value for padded class lanes -> exp() == 0


def _round_up(n, m):
    return ((n + m - 1) // m) * m


def _choose_tiling(B):
    """Pick (tile, Bp, num_steps): sublane-aligned tile, <8 wasted rows/step,
    and >=2 grid steps when there is enough work for two TensorCores (v7x)."""
    Bp8 = _round_up(max(B, 1), 8)
    num_steps = pl.cdiv(Bp8, BATCH_TILE_MAX)
    if num_steps == 1 and Bp8 >= 2 * MIN_ROWS_PER_STEP:
        num_steps = 2
    tile = _round_up(pl.cdiv(Bp8, num_steps), 8)
    Bp = tile * num_steps
    return tile, Bp, num_steps


def _mlp_kernel(x_ref, w1_ref, b1_ref, w2_ref, b2_ref, o_ref):
    # fc1: cast f32 activations to bf16 in-kernel (VPU is idle, HBM saved),
    # bf16 x bf16 -> f32 accumulation on the MXU, then bias + ReLU in f32.
    x = x_ref[...].astype(jnp.bfloat16)              # (TB, 784) bf16
    h = jnp.dot(x, w1_ref[...], preferred_element_type=jnp.float32)
    h = jnp.maximum(h + b1_ref[...], 0.0)            # (TB, 128) f32

    # fc2: full-width 128x128 bf16 matmul with f32 accumulation; padded class
    # lanes have zero weights and -1e30 bias so they vanish in the softmax.
    logits = jnp.dot(h.astype(jnp.bfloat16), w2_ref[...],
                     preferred_element_type=jnp.float32)
    logits = logits + b2_ref[...]                    # (TB, 128) f32

    # numerically-stable log_softmax over the (padded) class axis
    m = jnp.max(logits, axis=-1, keepdims=True)
    shifted = logits - m
    lse = jnp.log(jnp.sum(jnp.exp(shifted), axis=-1, keepdims=True))
    o_ref[...] = (shifted - lse).astype(o_ref.dtype)


@jax.jit
def nn_mnist_forward(x_nchw, w1, b1, w2, b2):
    """Pallas forward of NNMnist.

    x_nchw : (B, 1, 28, 28) float32
    w1     : (784, 128), b1: (1, 128)
    w2     : (128, 10),  b2: (1, 10)
    returns: (B, 10) float32 log-probabilities
    """
    B = x_nchw.shape[0]
    x = x_nchw.reshape(B, IN_FEATURES)               # same as x.view(-1, 784)

    tile, Bp, num_steps = _choose_tiling(B)
    if Bp != B:
        x = jnp.pad(x, ((0, Bp - B), (0, 0)))        # batch pad only (zeros)

    # --- parameters: weights to bf16 (f32 accumulation), biases stay f32 ---
    w1p = w1.astype(jnp.bfloat16)                                  # (784, 128)
    b1p = b1.astype(jnp.float32)                                   # (1, 128)
    w2p = jnp.pad(w2, ((0, 0), (0, C_PAD - N_CLASSES))).astype(jnp.bfloat16)
    b2p = jnp.pad(b2, ((0, 0), (0, C_PAD - N_CLASSES)),
                  constant_values=NEG_BIG).astype(jnp.float32)     # (1, 128)

    out = pl.pallas_call(
        _mlp_kernel,
        out_shape=jax.ShapeDtypeStruct((Bp, C_PAD), jnp.float32),
        grid_spec=pltpu.PrefetchScalarGridSpec(
            num_scalar_prefetch=0,
            grid=(num_steps,),
            in_specs=[
                # per-step slab of the batch; last dim 784 == full array dim
                pl.BlockSpec((tile, IN_FEATURES), lambda i: (i, 0)),
                # weights/biases: full arrays, resident across grid steps
                pl.BlockSpec((IN_FEATURES, H1), lambda i: (0, 0)),
                pl.BlockSpec((1, H1), lambda i: (0, 0)),
                pl.BlockSpec((H1, C_PAD), lambda i: (0, 0)),
                pl.BlockSpec((1, C_PAD), lambda i: (0, 0)),
            ],
            out_specs=pl.BlockSpec((tile, C_PAD), lambda i: (i, 0)),
        ),
        compiler_params=pltpu.CompilerParams(
            dimension_semantics=("parallel",),
            vmem_limit_bytes=48 * 1024 * 1024,
        ),
    )(x, w1p, b1p, w2p, b2p)

    return out[:B, :N_CLASSES]


def init_params(key):
    """Deterministic init mimicking torch.nn.Linear defaults:
    U(-1/sqrt(fan_in), 1/sqrt(fan_in)) for both weight and bias."""
    k1, k2, k3, k4 = jax.random.split(key, 4)
    bound1 = 1.0 / (IN_FEATURES ** 0.5)
    bound2 = 1.0 / (H1 ** 0.5)
    w1 = jax.random.uniform(k1, (IN_FEATURES, H1), jnp.float32, -bound1, bound1)
    b1 = jax.random.uniform(k2, (1, H1), jnp.float32, -bound1, bound1)
    w2 = jax.random.uniform(k3, (H1, N_CLASSES), jnp.float32, -bound2, bound2)
    b2 = jax.random.uniform(k4, (1, N_CLASSES), jnp.float32, -bound2, bound2)
    return w1, b1, w2, b2


def _reference_matched(x_nchw, w1, b1, w2, b2):
    """Reference applying the same bf16 quantization of both matmuls' inputs."""
    x = x_nchw.reshape(-1, IN_FEATURES)
    h = jnp.dot(x.astype(jnp.bfloat16), w1.astype(jnp.bfloat16),
                preferred_element_type=jnp.float32)
    h = jnp.maximum(h + b1, 0.0)
    logits = jnp.dot(h.astype(jnp.bfloat16), w2.astype(jnp.bfloat16),
                     preferred_element_type=jnp.float32) + b2
    return jax.nn.log_softmax(logits, axis=1)


def _reference_f32(x_nchw, w1, b1, w2, b2):
    """Pure-f32 reference matching the PyTorch module exactly."""
    x = x_nchw.reshape(-1, IN_FEATURES)
    h = jnp.maximum(x @ w1 + b1, 0.0)
    logits = h @ w2 + b2
    return jax.nn.log_softmax(logits, axis=1)


if __name__ == "__main__":
    key = jax.random.PRNGKey(0)
    k_x, k_p = jax.random.split(key)

    B = 16  # small demo batch; wrapper handles any B via tiling/padding
    x = jax.random.normal(k_x, (B, 1, 28, 28), jnp.float32)  # NCHW like torch
    w1, b1, w2, b2 = init_params(k_p)

    out = nn_mnist_forward(x, w1, b1, w2, b2)
    out = jax.block_until_ready(out)

    assert out.shape == (B, N_CLASSES)
    assert bool(jnp.all(jnp.isfinite(out))), "non-finite log-probs"

    # exact-semantics check against a reference using the same bf16 matmul inputs
    ref = _reference_matched(x, w1, b1, w2, b2)
    assert jnp.allclose(out, ref, atol=2e-3, rtol=2e-3), \
        "mismatch vs bf16-matched reference"

    # sanity check against the pure-f32 PyTorch-equivalent forward
    ref32 = _reference_f32(x, w1, b1, w2, b2)
    assert float(jnp.max(jnp.abs(out - ref32))) < 0.1, \
        "drift vs f32 reference too large"

    print("KERNEL_OK")
</pallas_src>

<mosaic_0001>
module attributes {stable_mosaic.version = 11 : i64} {
  func.func @_mlp_kernel(%arg0: i32, %arg1: memref<16x784xf32, #tpu.memory_space<vmem>>, %arg2: memref<784x128xbf16, #tpu.memory_space<vmem>>, %arg3: memref<1x128xf32, #tpu.memory_space<vmem>>, %arg4: memref<128x128xbf16, #tpu.memory_space<vmem>>, %arg5: memref<1x128xf32, #tpu.memory_space<vmem>>, %arg6: memref<16x128xf32, #tpu.memory_space<vmem>>) attributes {dimension_semantics = [#tpu.dimension_semantics<parallel>], iteration_bounds = array<i64: 1>, scalar_prefetch = 0 : i64, scratch_operands = 0 : i64, tpu.core_type = #tpu.core_type<tc>, window_params = [{transform_indices = @transform_0, window_bounds = array<i64: 16, 784>}, {pipeline_mode = #tpu.pipeline_mode<synchronous>, transform_indices = @transform_1, window_bounds = array<i64: 784, 128>}, {pipeline_mode = #tpu.pipeline_mode<synchronous>, transform_indices = @transform_2, window_bounds = array<i64: 1, 128>}, {pipeline_mode = #tpu.pipeline_mode<synchronous>, transform_indices = @transform_3, window_bounds = array<i64: 128, 128>}, {pipeline_mode = #tpu.pipeline_mode<synchronous>, transform_indices = @transform_4, window_bounds = array<i64: 1, 128>}, {transform_indices = @transform_5, window_bounds = array<i64: 16, 128>}]} {
    %c0 = arith.constant 0 : index
    %c0_0 = arith.constant 0 : index
    %0 = vector.load %arg1[%c0, %c0_0] : memref<16x784xf32, #tpu.memory_space<vmem>>, vector<16x784xf32>
    %1 = arith.truncf %0 : vector<16x784xf32> to vector<16x784xbf16>
    %c0_1 = arith.constant 0 : index
    %c0_2 = arith.constant 0 : index
    %2 = vector.load %arg2[%c0_1, %c0_2] : memref<784x128xbf16, #tpu.memory_space<vmem>>, vector<784x128xbf16>
    %cst = arith.constant dense<0.000000e+00> : vector<16x128xf32>
    %3 = tpu.matmul %1, %2, %cst {dimension_numbers = #tpu.dot_dimension_numbers<[1], [0], [0], [1], [0, 0, 1, 1], [], []>} : vector<16x784xbf16>, vector<784x128xbf16>, vector<16x128xf32> -> vector<16x128xf32>
    %c0_3 = arith.constant 0 : index
    %c0_4 = arith.constant 0 : index
    %4 = vector.load %arg3[%c0_3, %c0_4] : memref<1x128xf32, #tpu.memory_space<vmem>>, vector<1x128xf32>
    %5 = vector.broadcast %4 : vector<1x128xf32> to vector<16x128xf32>
    %6 = arith.addf %3, %5 : vector<16x128xf32>
    %cst_5 = arith.constant 0.000000e+00 : f32
    %7 = vector.broadcast %cst_5 : f32 to vector<16x128xf32>
    %8 = arith.maximumf %6, %7 : vector<16x128xf32>
    %9 = arith.truncf %8 : vector<16x128xf32> to vector<16x128xbf16>
    %c0_6 = arith.constant 0 : index
    %c0_7 = arith.constant 0 : index
    %10 = vector.load %arg4[%c0_6, %c0_7] : memref<128x128xbf16, #tpu.memory_space<vmem>>, vector<128x128xbf16>
    %cst_8 = arith.constant dense<0.000000e+00> : vector<16x128xf32>
    %11 = tpu.matmul %9, %10, %cst_8 {dimension_numbers = #tpu.dot_dimension_numbers<[1], [0], [0], [1], [0, 0, 1, 1], [], []>} : vector<16x128xbf16>, vector<128x128xbf16>, vector<16x128xf32> -> vector<16x128xf32>
    %c0_9 = arith.constant 0 : index
    %c0_10 = arith.constant 0 : index
    %12 = vector.load %arg5[%c0_9, %c0_10] : memref<1x128xf32, #tpu.memory_space<vmem>>, vector<1x128xf32>
    %13 = vector.broadcast %12 : vector<1x128xf32> to vector<16x128xf32>
    %14 = arith.addf %11, %13 : vector<16x128xf32>
    %cst_11 = arith.constant dense<0xFF800000> : vector<16xf32>
    %15 = vector.multi_reduction <maximumf>, %14, %cst_11 [1] : vector<16x128xf32> to vector<16xf32>
    %16 = vector.shape_cast %15 : vector<16xf32> to vector<16x1xf32>
    %17 = vector.broadcast %16 : vector<16x1xf32> to vector<16x128xf32>
    %18 = arith.subf %14, %17 : vector<16x128xf32>
    %19 = math.exp %18 : vector<16x128xf32>
    %cst_12 = arith.constant dense<0.000000e+00> : vector<16xf32>
    %20 = vector.multi_reduction <add>, %19, %cst_12 [1] : vector<16x128xf32> to vector<16xf32>
    %21 = vector.shape_cast %20 : vector<16xf32> to vector<16x1xf32>
    %22 = math.log %21 : vector<16x1xf32>
    %23 = vector.broadcast %22 : vector<16x1xf32> to vector<16x128xf32>
    %24 = arith.subf %18, %23 : vector<16x128xf32>
    %c0_13 = arith.constant 0 : index
    %c0_14 = arith.constant 0 : index
    %25 = vector.load %arg6[%c0_13, %c0_14] : memref<16x128xf32, #tpu.memory_space<vmem>>, vector<16x128xf32>
    tpu.vector_store %arg6[%c0_13, %c0_14], %24 {strides = array<i32>} : memref<16x128xf32, #tpu.memory_space<vmem>>, vector<16x128xf32>,
    return
  }
  func.func @transform_0(%arg0: i32) -> (i32, i32) {
    %c0_i32 = arith.constant 0 : i32
    %c0_i32_0 = arith.constant 0 : i32
    return %arg0, %c0_i32 : i32, i32
  }
  func.func @transform_1(%arg0: i32) -> (i32, i32) {
    %c0_i32 = arith.constant 0 : i32
    %c0_i32_0 = arith.constant 0 : i32
    %c0_i32_1 = arith.constant 0 : i32
    return %c0_i32, %c0_i32_0 : i32, i32
  }
  func.func @transform_2(%arg0: i32) -> (i32, i32) {
    %c0_i32 = arith.constant 0 : i32
    %c0_i32_0 = arith.constant 0 : i32
    %c0_i32_1 = arith.constant 0 : i32
    return %c0_i32, %c0_i32_0 : i32, i32
  }
  func.func @transform_3(%arg0: i32) -> (i32, i32) {
    %c0_i32 = arith.constant 0 : i32
    %c0_i32_0 = arith.constant 0 : i32
    %c0_i32_1 = arith.constant 0 : i32
    return %c0_i32, %c0_i32_0 : i32, i32
  }
  func.func @transform_4(%arg0: i32) -> (i32, i32) {
    %c0_i32 = arith.constant 0 : i32
    %c0_i32_0 = arith.constant 0 : i32
    %c0_i32_1 = arith.constant 0 : i32
    return %c0_i32, %c0_i32_0 : i32, i32
  }
  func.func @transform_5(%arg0: i32) -> (i32, i32) {
    %c0_i32 = arith.constant 0 : i32
    %c0_i32_0 = arith.constant 0 : i32
    return %arg0, %c0_i32 : i32, i32
  }
}

</mosaic_0001>

<bundles_post_ra>
// kernel: nn_mnist_forward.1
= control target key start
LH: loop header
LB: loop body
LE: loop exit
PB: predicated region body
PF: predicated region fallthrough
CT: control target
= control target key end

     0   :  { %v1020_v43 = vmov 0.0   ;;  %vm1021_vm0 = vmmov 0   ;;  %vm442_vm1 = vcmask 130048   ;;  %s1299_s0 = inlined_call_operand.vmem [shape: f32[16,784], index: 0, kind: input, shape index: {}]   ;;  %s1300_s1 = inlined_call_operand.vmem [shape: bf16[784,128], index: 1, kind: input, shape index: {}]   ;;  %s1301_s2 = inlined_call_operand.vmem [shape: f32[1,128], index: 2, kind: input, shape index: {}]   ;;  %s1302_s3 = inlined_call_operand.vmem [shape: bf16[128,128], index: 3, kind: input, shape index: {}]   ;;  %s1303_s4 = inlined_call_operand.vmem [shape: f32[1,128], index: 4, kind: input, shape index: {}]   ;;  %s1304_s5 = inlined_call_operand.hbm [shape: f32[16,128], index: 5, kind: output, shape index: {}]  }
   0x1   :  { %v931_v0 = vld [vmem:[%s1300_s1 + $0x40] sm:$0xff]   ;;  %v935_v4 = vld [vmem:[%s1300_s1 + $0x48] sm:$0xff]   ;;  %v939_v8 = vld [vmem:[%s1300_s1 + $0x50] sm:$0xff]  }
   0x2   :  { %v932_v1 = vld [vmem:[%s1300_s1] sm:$0xff]   ;;  %823 = vmatprep.subr.bf16.mxu0 %v931_v0  ;;  %v936_v5 = vld [vmem:[%s1300_s1 + $0x8] sm:$0xff]   ;;  %v940_v9 = vld [vmem:[%s1300_s1 + $0x10] sm:$0xff]  }
   0x3   :  { %v933_v2 = vld [vmem:[%s1300_s1 + $0xc0] sm:$0xff]   ;;  %824 = vmatpush3.bf16.msra.mxu0 %v932_v1  ;;  %v937_v6 = vld [vmem:[%s1300_s1 + $0xc8] sm:$0xff]   ;;  %v941_v10 = vld [vmem:[%s1300_s1 + $0xd0] sm:$0xff]  }
   0x4   :  { %v934_v3 = vld [vmem:[%s1300_s1 + $0x80] sm:$0xff]   ;;  %845 = vmatprep.subr.bf16.mxu1 %v933_v2  ;;  %825 = vmatprep.subr.bf16.mxu0 %v935_v4  ;;  %v938_v7 = vld [vmem:[%s1300_s1 + $0x88] sm:$0xff]   ;;  %v942_v11 = vld [vmem:[%s1300_s1 + $0x90] sm:$0xff]  }
   0x5   :  { %846 = vmatpush3.bf16.msra.mxu1 %v934_v3  ;;  %v943_v12 = vld [vmem:[%s1300_s1 + $0x58] sm:$0xff]   ;;  %v947_v16 = vld [vmem:[%s1300_s1 + $0x60] sm:$0xff]   ;;  %v951_v20 = vld [vmem:[%s1300_s1 + $0x68] sm:$0xff]  }
   0x6   :  { %847 = vmatprep.subr.bf16.mxu1 %v937_v6  ;;  %v944_v13 = vld [vmem:[%s1300_s1 + $0x18] sm:$0xff]   ;;  %v948_v17 = vld [vmem:[%s1300_s1 + $0x20] sm:$0xff]   ;;  %v952_v21 = vld [vmem:[%s1300_s1 + $0x28] sm:$0xff]  }
   0x7   :  { %826 = vmatpush3.bf16.msra.mxu0 %v936_v5  ;;  %v945_v14 = vld [vmem:[%s1300_s1 + $0xd8] sm:$0xff]   ;;  %v949_v18 = vld [vmem:[%s1300_s1 + $0xe0] sm:$0xff]   ;;  %v953_v22 = vld [vmem:[%s1300_s1 + $0xe8] sm:$0xff]  }
   0x8   :  { %827 = vmatprep.subr.bf16.mxu0 %v939_v8  ;;  %v946_v15 = vld [vmem:[%s1300_s1 + $0x98] sm:$0xff]   ;;  %v950_v19 = vld [vmem:[%s1300_s1 + $0xa0] sm:$0xff]   ;;  %v954_v23 = vld [vmem:[%s1300_s1 + $0xa8] sm:$0xff]  }
   0x9   :  { %848 = vmatpush3.bf16.msra.mxu1 %v938_v7  ;;  %v955_v24 = vld [vmem:[%s1300_s1 + $0x70] sm:$0xff]   ;;  %v959_v28 = vld [vmem:[%s1300_s1 + $0x78] sm:$0xff]   ;;  %v23_v31 = vld [vmem:[%s1299_s0 + $0x8] sm:$0xff] }
   0xa   :  { %849 = vmatprep.subr.bf16.mxu1 %v941_v10  ;;  %v956_v25 = vld [vmem:[%s1300_s1 + $0x30] sm:$0xff]   ;;  %v960_v29 = vld [vmem:[%s1300_s1 + $0x38] sm:$0xff]   ;;  %v30_v32 = vld [vmem:[%s1299_s0 + $0x40] sm:$0xff] }
   0xb   :  { %828 = vmatpush3.bf16.msra.mxu0 %v940_v9  ;;  %v957_v26 = vld [vmem:[%s1300_s1 + $0xf0] sm:$0xff]   ;;  %v961_v30 = vld [vmem:[%s1300_s1 + $0xf8] sm:$0xff]   ;;  %v37_v33 = vpack.c.bf16 %v30_v32, %v23_v31  ;;  %v22_v35 = vld [vmem:[%s1299_s0] sm:$0xff] }
   0xc   :  { %829 = vmatprep.subr.bf16.mxu0 %v943_v12  ;;  %v958_v27 = vld [vmem:[%s1300_s1 + $0xb0] sm:$0xff]   ;;  %v962_v34 = vld [vmem:[%s1300_s1 + $0xb8] sm:$0xff]   ;;  %v963_v38 = vld [vmem:[%s1300_s1 + $0x140] sm:$0xff]  }
   0xd   :  { %850 = vmatpush3.bf16.msra.mxu1 %v942_v11  ;;  %v29_v36 = vld [vmem:[%s1299_s0 + $0x38] sm:$0xff]  ;;  %478 = vmatprep.mubr.bf16.mxu0 %v37_v33  ;;  %v32_v40 = vld [vmem:[%s1299_s0 + $0x50] sm:$0xff]  ;;  %v964_v42 = vld [vmem:[%s1300_s1 + $0x100] sm:$0xff]  }
   0xe   :  { %851 = vmatprep.subr.bf16.mxu1 %v945_v14  ;;  %v36_v37 = vpack.c.bf16 %v29_v36, %v22_v35  ;;  %v25_v39 = vld [vmem:[%s1299_s0 + $0x18] sm:$0xff]  ;;  %v24_v44 = vld [vmem:[%s1299_s0 + $0x10] sm:$0xff]  ;;  %v31_v45 = vld [vmem:[%s1299_s0 + $0x48] sm:$0xff] }
   0xf   :  { %830 = vmatpush3.bf16.msra.mxu0 %v944_v13  ;;  %v39_v41 = vpack.c.bf16 %v32_v40, %v25_v39  ;;  %v38_v46 = vpack.c.bf16 %v31_v45, %v24_v44  ;;  %v965_v47 = vld [vmem:[%s1300_s1 + $0x148] sm:$0xff]   ;;  %v967_v49 = vld [vmem:[%s1300_s1 + $0x150] sm:$0xff]   ;;  %v969_v51 = vld [vmem:[%s1300_s1 + $0x158] sm:$0xff]  }
  0x10   :  { %831 = vmatprep.subr.bf16.mxu0 %v947_v16  ;;  %v966_v48 = vld [vmem:[%s1300_s1 + $0x108] sm:$0xff]   ;;  %v968_v50 = vld [vmem:[%s1300_s1 + $0x110] sm:$0xff]   ;;  %v970_v52 = vld [vmem:[%s1300_s1 + $0x118] sm:$0xff]  }
  0x11   :  { %852 = vmatpush3.bf16.msra.mxu1 %v946_v15  ;;  %519 = vmatprep.mubr.bf16.mxu1 %v39_v41  ;;  %v971_v53 = vld [vmem:[%s1300_s1 + $0x160] sm:$0xff]   ;;  %v973_v55 = vld [vmem:[%s1300_s1 + $0x168] sm:$0xff]   ;;  %v975_v59 = vld [vmem:[%s1300_s1 + $0x170] sm:$0xff]  }
  0x12   :  { %853 = vmatprep.subr.bf16.mxu1 %v949_v18  ;;  %v972_v54 = vld [vmem:[%s1300_s1 + $0x120] sm:$0xff]   ;;  %v27_v57 = vld [vmem:[%s1299_s0 + $0x28] sm:$0xff]  ;;  %v28_v62 = vld [vmem:[%s1299_s0 + $0x30] sm:$0xff] }
  0x13   :  { %832 = vmatpush3.bf16.msra.mxu0 %v948_v17  ;;  %v979_v56 = vld [vmem:[%s1300_s1 + $0x180] sm:$0xff]   ;;  %v974_v58 = vld [vmem:[%s1300_s1 + $0x128] sm:$0xff]   ;;  %v976_v1 = vld [vmem:[%s1300_s1 + $0x130] sm:$0xff]  }
  0x14   :  { %833 = vmatprep.subr.bf16.mxu0 %v951_v20  ;;  %v34_v60 = vld [vmem:[%s1299_s0 + $0x60] sm:$0xff]  ;;  %v35_v63 = vld [vmem:[%s1299_s0 + $0x68] sm:$0xff]  ;;  %v977_v2 = vld [vmem:[%s1300_s1 + $0x178] sm:$0xff]  }
  0x15   :  { %854 = vmatpush3.bf16.msra.mxu1 %v950_v19  ;;  %v41_v61 = vpack.c.bf16 %v34_v60, %v27_v57  ;;  %v42_v0 = vpack.c.bf16 %v35_v63, %v28_v62 }
  0x16   :  { %855 = vmatprep.subr.bf16.mxu1 %v953_v22 }
  0x17   :  { %834 = vmatpush3.bf16.msra.mxu0 %v952_v21 }
  0x18   :  { %835 = vmatprep.subr.bf16.mxu0 %v955_v24 }
  0x19   :  { %856 = vmatpush3.bf16.msra.mxu1 %v954_v23 }
  0x1a   :  { %857 = vmatprep.subr.bf16.mxu1 %v957_v26 }
  0x1b   :  { %836 = vmatpush3.bf16.msra.mxu0 %v956_v25 }
  0x1c   :  { %837 = vmatprep.subr.bf16.mxu0 %v959_v28 }
  0x1d   :  { %858 = vmatpush3.bf16.msra.mxu1 %v958_v27 }
  0x1e   :  { %859 = vmatprep.subr.bf16.mxu1 %v961_v30 }
  0x1f   :  { %838 = vmatpush3.bf16.msra.mxu0 %v960_v29 }
  0x20   :  { %867 = vmatprep.subr.bf16.mxu0 %v963_v38 }
  0x21   :  { %860 = vmatpush3.bf16.msra.mxu1 %v962_v34 }
  0x22   :  { %900 = vmatprep.subr.bf16.mxu1 %v1020_v43  ;;  %479 = vmatmul.mubr.bf16.vlgmr.msra.gmra.mrb[0].mxu0 %v36_v37 }
  0x23   :  { %868 = vmatpush3.bf16.msra.mxu0 %v964_v42  ;;  %560 = vmatprep.mubr.bf16.mxu0 %v41_v61 }
  0x24   :  { %520 = vmatmul.mubr.bf16.vlgmr.msra.gmra.mrb[0].mxu1 %v38_v46  ;;  %869 = vmatprep.subr.bf16.mxu0 %v965_v47 }
  0x25   :  { %902 = vmatprep.mubr.msk.bf16.mxu1 %vm1021_vm0, %v1020_v43  ;;  %901 = vmatpush3.bf16.msra.mxu1 %v979_v56 }
  0x26   :  { %906 = vmatprep.subr.bf16.mxu1 %v1020_v43 }
  0x27   :  { %870 = vmatpush3.bf16.msra.mxu0 %v966_v48 }
  0x28   :  { %871 = vmatprep.subr.bf16.mxu0 %v967_v49 }
  0x2b   :  { %872 = vmatpush3.bf16.msra.mxu0 %v968_v50 }
  0x2c   :  { %873 = vmatprep.subr.bf16.mxu0 %v969_v51  ;;  %903 = vmatmul.mubr.msk.bf16.vlgmr.msra.gmra.mrb[4].mxu1 %vm442_vm1, %v42_v0 }
  0x2d   :  { %922 = vmatprep.mubr.msk.bf16.mxu1 %vm1021_vm0, %v1020_v43 }
  0x2f   :  { %874 = vmatpush3.bf16.msra.mxu0 %v970_v52 }
  0x30   :  { %875 = vmatprep.subr.bf16.mxu0 %v971_v53 }
  0x33   :  { %876 = vmatpush3.bf16.msra.mxu0 %v972_v54 }
  0x34   :  { %877 = vmatprep.subr.bf16.mxu0 %v973_v55 }
  0x37   :  { %878 = vmatpush3.bf16.msra.mxu0 %v974_v58 }
  0x38   :  { %879 = vmatprep.subr.bf16.mxu0 %v975_v59 }
  0x39   :  { %10 = vsyncpa [#allocation3], 0  ;;  %v978_v3 = vld [vmem:[%s1300_s1 + $0x138] sm:$0xff]   ;;  %v26_v4 = vld [vmem:[%s1299_s0 + $0x20] sm:$0xff] }
  0x3a   :  { %v33_v5 = vld [vmem:[%s1299_s0 + $0x58] sm:$0xff]  ;;  %v980_v7 = vld [vmem:[%s1302_s3] sm:$0xff]   ;;  %v981_v8 = vld [vmem:[%s1302_s3 + $0x8] sm:$0xff]  }
  0x3b   :  { %880 = vmatpush3.bf16.msra.mxu0 %v976_v1  ;;  %v40_v6 = vpack.c.bf16 %v33_v5, %v26_v4  ;;  %907 = vmatpush3.bf16.msra.mxu1 %v980_v7  ;;  %v982_v9 = vld [vmem:[%s1302_s3 + $0x10] sm:$0xff]   ;;  %v983_v10 = vld [vmem:[%s1302_s3 + $0x18] sm:$0xff]   ;;  %v984_v11 = vld [vmem:[%s1302_s3 + $0x20] sm:$0xff]  }
  0x3c   :  { %881 = vmatprep.subr.bf16.mxu0 %v977_v2  ;;  %908 = vmatprep.subr.bf16.mxu1 %v1020_v43  ;;  %v985_v12 = vld [vmem:[%s1302_s3 + $0x28] sm:$0xff]   ;;  %v986_v13 = vld [vmem:[%s1302_s3 + $0x30] sm:$0xff]   ;;  %v987_v14 = vld [vmem:[%s1302_s3 + $0x38] sm:$0xff]  }
  0x3d   :  { %v763_v16 = vld [vmem:[%s1301_s2] ss:$0 sm:$0xff] }
  0x3e   :  { %v814_v49 = vld [vmem:[%s1303_s4] ss:$0 sm:$0xff]  ;;  %s1022_s4 = smov [#allocation2]  }
  0x3f   :  { %882 = vmatpush3.bf16.msra.mxu0 %v978_v3  ;;  %909 = vmatpush3.bf16.msra.mxu1 %v981_v8  ;;  %s752_s10 = sshll.u32 %s1022_s4, 4  ;;  %s753_s10 = int_to_ptr.vmem [resolvable:$true] %s752_s10 }
  0x40   :  { %910 = vmatprep.subr.bf16.mxu1 %v1020_v43  ;;  %s996_s11 = scalar_lea.vmem %s753_s10, 256  ;;  %p1001_p1 = scmp.lt.s32.totalorder %s753_s10, %s753_s10 }
  0x41   :  { %p997_p0 = scmp.ne.s32.totalorder %s753_s10, %s996_s11  ;;  %p1002_p2 = scmp.lt.s32.totalorder %s996_s11, %s996_s11 }
  0x42   :  { %561 = vmatmul.mubr.bf16.vlgmr.msra.gmra.mrb[4].mxu0 %v40_v6 }
  0x43   :  { %911 = vmatpush3.bf16.msra.mxu1 %v982_v9  ;;  %p1003_p3 = por %p1002_p2, %p1001_p1 }
  0x44   :  { %912 = vmatprep.subr.bf16.mxu1 %v1020_v43 }
  0x45   :  { %p1004_p4 = pnand %p1003_p3, %p997_p0 }
  0x47   :  { %913 = vmatpush3.bf16.msra.mxu1 %v983_v10 }
  0x48   :  { %914 = vmatprep.subr.bf16.mxu1 %v1020_v43 }
  0x4b   :  { %915 = vmatpush3.bf16.msra.mxu1 %v984_v11 }
  0x4c   :  { %916 = vmatprep.subr.bf16.mxu1 %v1020_v43 }
  0x4f   :  { %917 = vmatpush3.bf16.msra.mxu1 %v985_v12 }
  0x50   :  { %918 = vmatprep.subr.bf16.mxu1 %v1020_v43 }
  0x53   :  { %919 = vmatpush3.bf16.msra.mxu1 %v986_v13 }
  0x54   :  { %920 = vmatprep.subr.bf16.mxu1 %v1020_v43 }
  0x57   :  { %921 = vmatpush3.bf16.msra.mxu1 %v987_v14 }
  0xf5   :  { %v839_v15 = vpop.f32.mrb[0].mxu0 }
  0xf6   :  { %v840_v17 = vpop.f32.mrb[1].mxu0 }
  0xf7   :  { %v841_v18 = vadd.f32 %v840_v17, %v839_v15  ;;  %v842_v19 = vpop.f32.mrb[2].mxu0  ;;  %v861_v20 = vpop.f32.mrb[0].mxu1 }
  0xf8   :  { %v843_v21 = vpop.f32.mrb[3].mxu0  ;;  %v862_v24 = vpop.f32.mrb[1].mxu1 }
  0xf9   :  { %v481_v22 = vadd.f32 %v841_v18, %v763_v16  ;;  %v844_v23 = vadd.f32 %v843_v21, %v842_v19  ;;  %v863_v25 = vadd.f32 %v862_v24, %v861_v20  ;;  %v864_v26 = vpop.f32.mrb[2].mxu1 }
  0xfa   :  { %v865_v28 = vpop.f32.mrb[3].mxu1 }
  0xfb   :  { %v484_v27 = vadd.f32 %v844_v23, %v763_v16  ;;  %v522_v29 = vadd.f32 %v863_v25, %v481_v22  ;;  %v866_v30 = vadd.f32 %v865_v28, %v864_v26 }
  0xfd   :  { %v525_v31 = vadd.f32 %v866_v30, %v484_v27 }
  0xff   :  { %v603_v32 = vpop.f32.mrb[4].mxu1 }
 0x100   :  { %v904_v33 = vpop.f32.mrb[5].mxu1 }
 0x101   :  { %v606_v34 = vpop.f32.mrb[6].mxu1 }
 0x102   :  { %v905_v35 = vpop.f32.mrb[7].mxu1 }
 0x115   :  { %v883_v36 = vpop.f32.mrb[4].mxu0 }
 0x116   :  { %v884_v37 = vpop.f32.mrb[5].mxu0 }
 0x117   :  { %v885_v38 = vadd.f32 %v884_v37, %v883_v36  ;;  %v886_v39 = vpop.f32.mrb[6].mxu0 }
 0x118   :  { %v887_v40 = vpop.f32.mrb[7].mxu0 }
 0x119   :  { %v563_v41 = vadd.f32 %v885_v38, %v522_v29  ;;  %v888_v42 = vadd.f32 %v887_v40, %v886_v39 }
 0x11b   :  { %v604_v43 = vadd.f32 %v603_v32, %v563_v41  ;;  %v566_v44 = vadd.f32 %v888_v42, %v525_v31 }
 0x11d   :  { %v607_v45 = vadd.f32 %v606_v34, %v566_v44  ;;  %v610_v46 = vmax.f32 %v604_v43, 0.0 }
 0x11f   :  { %v611_v47 = vmax.f32 %v607_v45, 0.0 }
 0x121   :  { %v612_v48 = vpack.c.bf16 %v611_v47, %v610_v46 }
 0x123   :  { %923 = vmatmul.mubr.bf16.vlgmr.msra.gmra.mrb[8].mxu1 %v612_v48 }
 0x1f6   :  { %v718_v50 = vpop.f32.mrb[8].mxu1 }
 0x1f7   :  { %v719_v51 = vadd.f32 %v814_v49, %v718_v50  ;;  %v924_v52 = vpop.f32.mrb[9].mxu1 }
 0x1f8   :  { %v721_v53 = vpop.f32.mrb[10].mxu1 }
 0x1f9   :  { %725 = vmax.xlane.f32.xlu0 %v719_v51  ;;  %v925_v54 = vpop.f32.mrb[11].mxu1  ;;  %v722_v55 = vadd.f32 %v814_v49, %v721_v53 }
 0x1fd   :  { %727 = vmax.xlane.f32.xlu0 %v722_v55 }
 0x286   :  { %v726_v56 = vpop.xlane.xlu0 %725 }
 0x287   :  { %v729_v57 = vsub.f32 %v719_v51, %v726_v56 }
 0x289   :  { %v731_v58 = vmul.f32 1.442695, %v729_v57 }
 0x28a   :  { %v728_v59 = vpop.xlane.xlu0 %727 }
 0x28b   :  { %v730_v60 = vsub.f32 %v722_v55, %v728_v59  ;;  %988 = vpow2.f32 %v731_v58 }
 0x28d   :  { %v733_v61 = vmul.f32 1.442695, %v730_v60 }
 0x28f   :  { %990 = vpow2.f32 %v733_v61 }
 0x295   :  { %v989_v62 = vpop.eup %988 }
 0x296   :  { %735 = vadd.xlane.f32.xlu1 %v989_v62 }
 0x299   :  { %v991_v63 = vpop.eup %990 }
 0x29a   :  { %737 = vadd.xlane.f32.xlu1 %v991_v63 }
 0x323   :  { %v736_v0 = vpop.xlane.xlu1 %735 }
 0x324   :  { %992 = vlog2.f32 %v736_v0 }
 0x327   :  { %v738_v1 = vpop.xlane.xlu1 %737 }
 0x328   :  { %994 = vlog2.f32 %v738_v1 }
 0x32e   :  { %v993_v2 = vpop.eup %992 }
 0x32f   :  { %v740_v3 = vmul.f32 0.6931472, %v993_v2 }
 0x331   :  { %v743_v4 = vsub.f32 %v729_v57, %v740_v3 }
 0x332   :  { %v995_v5 = vpop.eup %994 }
 0x333   :  { %745 = vst [vmem:[#allocation2] sm:$0xff] %v743_v4  ;;  %v742_v6 = vmul.f32 0.6931472, %v995_v5 }
 0x335   :  { %v744_v7 = vsub.f32 %v730_v60, %v742_v6 }
 0x337   :  { %746 = vst [vmem:[#allocation2 + $0x8] sm:$0xff] %v744_v7 }
 0x338   :  { %1007 = shalt.err (!%p1004_p4)
}
 0x339   :  { %s1008_s14 = scalar_lea.hbm %s1304_s5, 256 }
 0x33a   :  { %p1009_p5 = scmp.ne.s32.totalorder %s1304_s5, %s1008_s14  ;;  %p1012_p6 = scmp.lt.u32.totalorder %s1008_s14, %s1304_s5 }
 0x33c   :  { %p1014_p7 = pnand %p1012_p6, %p1009_p5 }
 0x33e   :  { %1017 = shalt.err (!%p1014_p7)
}
 0x33f   :  { %s1023_s19 = smov 128   ;;  %s1024_s20 = smov 8  }
 0x340   :  { %758 = dma.vmem_to_hbm [thread:$0]  %s753_s10, 256, %s1304_s5, [#allocation3], %s1023_s19, %s1023_s19, %s1024_s20  }
 0x341   :  { %1018 = dma.done.wait [#allocation3], 256  }
 0x342   :  { %1019 = vsyncadd [#allocation3], 4294967040 }
 0x343   :  { %762 = vsyncpa [#allocation3], 1 }

</bundles_post_ra>
